<compile_context>
chip_gen: v6e
topology: v6e:2x2x1
jax: 0.10.0
libtpu: 0.0.40
codegen_flags: <defaults>
</compile_context>

<pallas_src>
import functools

import jax
import jax.numpy as jnp
from jax import lax
from jax.experimental import pallas as pl
from jax.experimental.pallas import tpu as pltpu

_LANE = 128
_ACC_W = 1024   # lane width of the streaming accumulator (8 f32 vregs)


def _pick_block_bytes():
    """Per-generation input-block byte budget (the pipeline double-buffers)."""
    kind = ""
    try:
        kind = jax.devices()[0].device_kind.lower()
    except Exception:
        pass
    if "v7" in kind or "7x" in kind:
        # ~3.2 TB/s per TC: bigger blocks amortize the ~0.35us/step cost.
        # 2 x 8 MiB double-buffered stays well under the 32 MiB scoped limit.
        return 8 * 1024 * 1024
    if "v6" in kind:
        return 4 * 1024 * 1024
    # v5e (and unknown): 2 x 2 MiB stays comfortably under the 16 MiB limit.
    return 2 * 1024 * 1024


def _sum_single_kernel(x_ref, o_ref, *, acc_dtype):
    """Single-block path: x_ref is (TILE_B, N); whole row reduced in one step."""
    x = x_ref[...].astype(acc_dtype)
    o_ref[...] = jnp.sum(x, axis=-1, keepdims=True).astype(o_ref.dtype)


def _sum_stream_kernel(x_ref, o_ref, acc_ref, *,
                       n, tile_n, acc_w, acc_dtype, ragged):
    """Streaming path: x_ref is a (TILE_B, tile_n) chunk of the (B, N) slab.

    acc_ref is a resident (TILE_B, acc_w) accumulator; each step only does
    lane-chunk vector adds into it.  The ragged-lane-tail mask and the single
    cross-lane reduce + store happen only on the last reduction step.
    """
    k = pl.program_id(1)
    last = pl.num_programs(1) - 1
    tile_b = acc_ref.shape[0]
    n_iters = tile_n // acc_w

    @pl.when(k == 0)
    def _init():
        acc_ref[...] = jnp.zeros(acc_ref.shape, acc_dtype)

    def _accumulate(masked):
        def body(c, a):
            off = pl.multiple_of(c * acc_w, acc_w)
            xc = x_ref[:, pl.ds(off, acc_w)].astype(acc_dtype)
            if masked:
                # Only compiled into the tail branch (and only run on k==last):
                # zero out lanes past the end of the real data (block padding
                # contents are not guaranteed to be zero).
                col = lax.broadcasted_iota(jnp.int32, xc.shape, 1) \
                    + (k * tile_n + off)
                xc = jnp.where(col < n, xc, jnp.zeros_like(xc))
            return a + xc
        part = lax.fori_loop(0, n_iters, body,
                             jnp.zeros((tile_b, acc_w), acc_dtype))
        acc_ref[...] += part

    if ragged:
        @pl.when(k != last)
        def _steady():
            _accumulate(False)          # unmasked fast body for full blocks

        @pl.when(k == last)
        def _tail():
            _accumulate(True)           # masked body only for the tail block
    else:
        _accumulate(False)

    @pl.when(k == last)
    def _epilogue():
        # Single cross-lane reduce + cast + store, only on the final step.
        o_ref[...] = jnp.sum(acc_ref[...], axis=-1,
                             keepdims=True).astype(o_ref.dtype)


def summation(x, *, block_bytes=None):
    """Sum over all dims except batch, keepdims=True (matches torch module)."""
    B = x.shape[0]
    out_shape_full = (B,) + (1,) * (x.ndim - 1)
    x2d = x.reshape(B, -1)
    N = x2d.shape[1]

    if B == 0 or N == 0:
        return jnp.zeros(out_shape_full, x.dtype)

    if block_bytes is None:
        block_bytes = _pick_block_bytes()

    # Exact integer accumulation for integer inputs, f32 for floats.
    acc_dtype = jnp.float32 if jnp.issubdtype(x.dtype, jnp.floating) else jnp.int32
    itemsize = jnp.dtype(x.dtype).itemsize
    row_bytes = N * itemsize

    if row_bytes * min(B, 8) <= block_bytes:
        # ---------------- single-block path ----------------
        # Each batch row's whole reduction fits in one block; tile the batch
        # dim so every grid step moves ~block_bytes (amortizes per-step cost).
        fit = block_bytes // row_bytes
        if B <= 8 or fit >= B:
            tile_b = B                       # full batch dim (always legal)
        else:
            tile_b = max(8, (fit // 8) * 8)  # multiple of 8 sublanes
        grid = (pl.cdiv(B, tile_b),)

        kernel = functools.partial(_sum_single_kernel, acc_dtype=acc_dtype)
        out = pl.pallas_call(
            kernel,
            out_shape=jax.ShapeDtypeStruct((B, 1), x.dtype),
            grid_spec=pltpu.PrefetchScalarGridSpec(
                num_scalar_prefetch=0,
                grid=grid,
                in_specs=[pl.BlockSpec((tile_b, N), lambda b: (b, 0))],
                out_specs=pl.BlockSpec((tile_b, 1), lambda b: (b, 0)),
            ),
            compiler_params=pltpu.CompilerParams(
                dimension_semantics=("parallel",)),
        )(x2d)
    else:
        # ---------------- streaming path (large N) ----------------
        tile_b = B if B < 8 else 8
        tile_n = max(_ACC_W,
                     (block_bytes // (tile_b * itemsize)) // _ACC_W * _ACC_W)
        acc_w = _ACC_W if tile_n % _ACC_W == 0 else _LANE
        k_tiles = pl.cdiv(N, tile_n)
        ragged = (N % tile_n) != 0

        kernel = functools.partial(
            _sum_stream_kernel, n=N, tile_n=tile_n, acc_w=acc_w,
            acc_dtype=acc_dtype, ragged=ragged)

        # TODO(synk): on v7x with a single batch tile (e.g. B=1) and many k
        # tiles, split the reduction axis across the two TensorCores (per-core
        # partial sums combined in the wrapper) to use full per-chip HBM BW.
        out = pl.pallas_call(
            kernel,
            out_shape=jax.ShapeDtypeStruct((B, 1), x.dtype),
            grid_spec=pltpu.PrefetchScalarGridSpec(
                num_scalar_prefetch=0,
                grid=(pl.cdiv(B, tile_b), k_tiles),
                in_specs=[pl.BlockSpec((tile_b, tile_n), lambda b, k: (b, k))],
                out_specs=pl.BlockSpec((tile_b, 1), lambda b, k: (b, 0)),
                scratch_shapes=[pltpu.VMEM((tile_b, acc_w), acc_dtype)],
            ),
            compiler_params=pltpu.CompilerParams(
                dimension_semantics=("parallel", "arbitrary")),
        )(x2d)

    return out.reshape(out_shape_full)


if __name__ == "__main__":
    key = jax.random.PRNGKey(0)
    k1, k2, k3, k4 = jax.random.split(key, 4)

    # 1) Primary check: NCHW feature map -> single-block path.
    x = jax.random.normal(k1, (2, 4, 16, 16), dtype=jnp.float32)
    out = jax.block_until_ready(summation(x))
    ref = jnp.sum(x, axis=(1, 2, 3), keepdims=True)
    assert out.shape == ref.shape == (2, 1, 1, 1), out.shape
    assert jnp.allclose(out, ref, atol=1e-3, rtol=1e-4), (out, ref)

    # 2) N not a multiple of 128 -> single-block path handles it natively.
    x2 = jax.random.normal(k2, (2, 3, 5, 7), dtype=jnp.float32)
    out2 = jax.block_until_ready(summation(x2))
    ref2 = jnp.sum(x2, axis=(1, 2, 3), keepdims=True)
    assert out2.shape == ref2.shape == (2, 1, 1, 1), out2.shape
    assert jnp.allclose(out2, ref2, atol=1e-3, rtol=1e-4), (out2, ref2)

    # 3) Force the streaming path at a small shape (tiny block budget):
    #    exercises the resident accumulator, ragged lane tail masking on the
    #    last step, and a ragged batch tile.
    x3 = jax.random.normal(k3, (10, 1400), dtype=jnp.float32)
    out3 = jax.block_until_ready(summation(x3, block_bytes=8 * 1024))
    ref3 = jnp.sum(x3, axis=1, keepdims=True)
    assert out3.shape == ref3.shape == (10, 1), out3.shape
    assert jnp.allclose(out3, ref3, atol=1e-3, rtol=1e-4), (out3, ref3)

    # 4) Integer input: exact integer accumulation.
    x4 = jax.random.randint(k4, (2, 4, 16, 16), -8, 8, dtype=jnp.int32)
    out4 = jax.block_until_ready(summation(x4))
    ref4 = jnp.sum(x4, axis=(1, 2, 3), keepdims=True)
    assert out4.shape == ref4.shape == (2, 1, 1, 1), out4.shape
    assert jnp.array_equal(out4, ref4), (out4, ref4)

    print("KERNEL_OK")
</pallas_src>

<mosaic_0001>
module attributes {stable_mosaic.version = 11 : i64} {
  func.func @_sum_single_kernel(%arg0: i32, %arg1: memref<2x1024xf32, #tpu.memory_space<vmem>>, %arg2: memref<2x1xf32, #tpu.memory_space<vmem>>) attributes {dimension_semantics = [#tpu.dimension_semantics<parallel>], iteration_bounds = array<i64: 1>, scalar_prefetch = 0 : i64, scratch_operands = 0 : i64, tpu.core_type = #tpu.core_type<tc>, window_params = [{transform_indices = @transform_0, window_bounds = array<i64: 2, 1024>}, {transform_indices = @transform_1, window_bounds = array<i64: 2, 1>}]} {
    %c0 = arith.constant 0 : index
    %c0_0 = arith.constant 0 : index
    %0 = vector.load %arg1[%c0, %c0_0] : memref<2x1024xf32, #tpu.memory_space<vmem>>, vector<2x1024xf32>
    %cst = arith.constant dense<0.000000e+00> : vector<2xf32>
    %1 = vector.multi_reduction <add>, %0, %cst [1] : vector<2x1024xf32> to vector<2xf32>
    %2 = vector.shape_cast %1 : vector<2xf32> to vector<2x1xf32>
    %c0_1 = arith.constant 0 : index
    %c0_2 = arith.constant 0 : index
    %3 = vector.load %arg2[%c0_1, %c0_2] : memref<2x1xf32, #tpu.memory_space<vmem>>, vector<2x1xf32>
    tpu.vector_store %arg2[%c0_1, %c0_2], %2 {strides = array<i32>} : memref<2x1xf32, #tpu.memory_space<vmem>>, vector<2x1xf32>,
    return
  }
  func.func @transform_0(%arg0: i32) -> (i32, i32) {
    %c0_i32 = arith.constant 0 : i32
    %c0_i32_0 = arith.constant 0 : i32
    return %arg0, %c0_i32 : i32, i32
  }
  func.func @transform_1(%arg0: i32) -> (i32, i32) {
    %c0_i32 = arith.constant 0 : i32
    %c0_i32_0 = arith.constant 0 : i32
    return %arg0, %c0_i32 : i32, i32
  }
}

</mosaic_0001>

<bundles_post_ra>
// kernel: tpu_custom_call.1
= control target key start
LH: loop header
LB: loop body
LE: loop exit
PB: predicated region body
PF: predicated region fallthrough
CT: control target
= control target key end

     0   :  { %6 = vsyncpa [#allocation3], 0  ;;  %s117_s6 = smov [#allocation2]   ;;  %s143_s0 = inlined_call_operand.hbm [shape: f32[2,1024], index: 0, kind: input, shape index: {}]   ;;  %s144_s1 = inlined_call_operand.vmem [shape: f32[2,1], index: 1, kind: output, shape index: {}]  }
   0x1   :  { %s13_s7 = sshll.u32 %s117_s6, 4  ;;  %s14_s7 = int_to_ptr.vmem [resolvable:$true] %s13_s7 }
   0x2   :  { %s103_s8 = scalar_lea.vmem %s14_s7, 256  ;;  %p108_p1 = scmp.lt.s32.totalorder %s14_s7, %s14_s7 }
   0x3   :  { %p104_p0 = scmp.ne.s32.totalorder %s14_s7, %s103_s8  ;;  %p109_p2 = scmp.lt.s32.totalorder %s103_s8, %s103_s8 }
   0x5   :  { %p110_p3 = por %p109_p2, %p108_p1 }
   0x7   :  { %p111_p4 = pnand %p110_p3, %p104_p0 }
   0x9   :  { %114 = shalt.err (!%p111_p4)
}
   0xa   :  { %16 = dma.hbm_to_vmem [thread:$0]  %s143_s0, 256, %s14_s7, [#allocation3]  }
   0xb   :  { %115 = dma.done.wait [#allocation3], 256  }
   0xc   :  { %116 = vsyncadd [#allocation3], 4294967040  ;;  %v28_v0 = vlaneseq  ;;  %v118_v1 = vmov 1983009808   ;;  %v20_v6 = vld [vmem:[#allocation2] sm:$0xff]  ;;  %v21_v7 = vld [vmem:[#allocation2 + $0x8] sm:$0xff] }
   0xd   :  { %v26_v2 = vunpack.c.l.s4 %v118_v1  ;;  %v24_v8 = vcombine.high %v20_v6, %v20_v6  ;;  %vm66_vm0 = vcmask 1041408   ;;  %v41_v12 = vcombine.high %v21_v7, %v21_v7 }
   0xe   :  { %v29_v3 = vshrl.u32 %v28_v0, 7  ;;  %vm84_vm1 = vcmask 1024  }
   0xf   :  { %v27_v4 = vunpack.c.0.s8 %v26_v2 }
  0x11   :  { %v30_v5 = vsub.s32 %v27_v4, %v29_v3 }
  0x13   :  { %v31_v9 = vrot.slane %v20_v6, %v30_v5  ;;  %v38_v10 = vrot.slane %v24_v8, %v30_v5  ;;  %v48_v13 = vrot.slane %v21_v7, %v30_v5  ;;  %v55_v19 = vrot.slane %v41_v12, %v30_v5 }
  0x15   :  { %v39_v11 = vcombine.high %v31_v9, %v31_v9  ;;  %v67_v14 = vsel %vm66_vm0, %v31_v9, 0.0  ;;  %v40_v15 = vcombine.high %v38_v10, %v38_v10  ;;  %v70_v17 = vsel %vm66_vm0, %v38_v10, 0.0 }
  0x16   :  { %v56_v20 = vcombine.high %v48_v13, %v48_v13  ;;  %v74_v23 = vsel %vm66_vm0, %v48_v13, 0.0  ;;  %v57_v25 = vcombine.high %v55_v19, %v55_v19  ;;  %v78_v28 = vsel %vm66_vm0, %v55_v19, 0.0 }
  0x17   :  { %v68_v16 = vsel %vm66_vm0, %v39_v11, 0.0  ;;  %v72_v21 = vsel %vm66_vm0, %v40_v15, 0.0 }
  0x18   :  { %v69_v18 = vadd.f32 %v68_v16, %v67_v14  ;;  %v76_v26 = vsel %vm66_vm0, %v56_v20, 0.0  ;;  %v80_v30 = vsel %vm66_vm0, %v57_v25, 0.0 }
  0x1a   :  { %v71_v22 = vadd.f32 %v70_v17, %v69_v18 }
  0x1c   :  { %v73_v24 = vadd.f32 %v72_v21, %v71_v22 }
  0x1e   :  { %v75_v27 = vadd.f32 %v74_v23, %v73_v24 }
  0x20   :  { %v77_v29 = vadd.f32 %v76_v26, %v75_v27 }
  0x22   :  { %v79_v31 = vadd.f32 %v78_v28, %v77_v29 }
  0x24   :  { %v81_v32 = vadd.f32 %v80_v30, %v79_v31 }
  0x26   :  { %82 = vadd.xlane.f32.xlu0 %v81_v32 }
  0xaf   :  { %v83_v33 = vpop.xlane.xlu0 %82 }
  0xb0   :  { %85 = vst.msk [vmem:[%s144_s1] sm:$0x3] %vm84_vm1, %v83_v33 }
  0xb1   :  { %90 = vsyncpa [#allocation3], 1 }

</bundles_post_ra>
